<compile_context>
chip_gen: v7x
topology: tpu7x:2x2x1
jax: 0.10.0
libtpu: 0.0.40
codegen_flags: <defaults>
</compile_context>

<pallas_src>
import functools

import jax
import jax.numpy as jnp
from jax.experimental import pallas as pl
from jax.experimental.pallas import tpu as pltpu

EPS = 1e-09
TEMP = 0.66          # digit_temp (unused in the forward math, kept for parity)
OUT_LANES = 128      # lane-dense output slab width: [mu | logvar | std | z | 0...]
TM_MAX = 512         # row-tile cap; actual VMEM footprint at this size is ~6 MiB


def _round_up(x, m):
    return (x + m - 1) // m * m


def encoder_b_kernel(x_ref, eps_ref, w1_ref, b1_ref, w2_ref, b2_ref,
                     w3_ref, b3_ref, out_ref, *, zdim):
    # x: (TM, 10) f32.  MXU operands cast to bf16, f32 accumulation.
    x = x_ref[...].astype(jnp.bfloat16)

    # enc_hidden: Linear(10, 512) -> ReLU -> Linear(512, 512) -> ReLU
    h1 = jnp.dot(x, w1_ref[...], preferred_element_type=jnp.float32) + b1_ref[...]
    h1 = jnp.maximum(h1, 0.0)
    h2 = jnp.dot(h1.astype(jnp.bfloat16), w2_ref[...],
                 preferred_element_type=jnp.float32) + b2_ref[...]
    h2 = jnp.maximum(h2, 0.0)

    # Merged fc head: one (512, 128) matmul.  Column layout of w3/b3 is
    # [W_mu | W_lv | W_lv | 0...], so stats lanes hold [mu | lv | lv | 0...].
    stats = jnp.dot(h2.astype(jnp.bfloat16), w3_ref[...],
                    preferred_element_type=jnp.float32) + b3_ref[...]

    lane = jax.lax.broadcasted_iota(jnp.int32, stats.shape, 1)
    is_lv = (lane >= zdim) & (lane < 3 * zdim)
    is_std = (lane >= 2 * zdim) & (lane < 3 * zdim)

    # stdShared = sqrt(exp(logvarShared) + EPS).  exp is masked to the logvar
    # lanes so an overflowing exp(mu) can never contaminate other outputs.
    s = jnp.sqrt(jnp.exp(jnp.where(is_lv, stats, 0.0)) + EPS)

    # Dense, lane-aligned 128-wide store: lanes [mu | logvar | std | 0...].
    out_ref[...] = jnp.where(is_std, s, stats).astype(out_ref.dtype)

    # Reparameterised sample z = mu + std * eps on narrow lanes.  mu/std are
    # read back from the just-written block (masked ref loads at static lane
    # offsets), the FMA is done in f32, and z lands on lanes [3*zdim, 4*zdim)
    # with one small masked VMEM store (HBM writeback stays the dense block).
    mu_n = out_ref[:, 0:zdim].astype(jnp.float32)
    std_n = out_ref[:, 2 * zdim:3 * zdim].astype(jnp.float32)
    z = mu_n + std_n * eps_ref[...]
    out_ref[:, 3 * zdim:4 * zdim] = z.astype(out_ref.dtype)


@functools.partial(jax.jit, static_argnames=("block_rows",))
def encoder_b_forward(labels, eps, params, *, block_rows=TM_MAX):
    """labels: (S, B, 10) f32, eps: (S, B, zdim) f32. Returns (z, mu, logvar, std)."""
    S, B, D_in = labels.shape
    H = params["w1"].shape[1]
    zdim = params["b_fc"].shape[-1] // 2
    assert 4 * zdim <= OUT_LANES
    N = S * B

    # Row tile: multiple of 16 (bf16 sublane packing), capped at block_rows,
    # and split so the grid has >= 2 steps when possible (v7x dual-TC sharding).
    block_rows = max(16, _round_up(block_rows, 16))
    n16 = _round_up(N, 16)
    tm = min(block_rows, max(16, _round_up(pl.cdiv(n16, 2), 16)))
    n_pad = _round_up(n16, tm)

    x = labels.reshape(N, D_in).astype(jnp.float32)
    e = eps.reshape(N, zdim).astype(jnp.float32)
    if n_pad != N:
        x = jnp.pad(x, ((0, n_pad - N), (0, 0)))
        e = jnp.pad(e, ((0, n_pad - N), (0, 0)))

    # Pack the fc head: columns [W_mu | W_lv | W_lv | 0...], same for the bias.
    w_mu = params["w_fc"][:, :zdim]
    w_lv = params["w_fc"][:, zdim:]
    w3 = jnp.pad(jnp.concatenate([w_mu, w_lv, w_lv], axis=1),
                 ((0, 0), (0, OUT_LANES - 3 * zdim)))
    b_mu = params["b_fc"][:, :zdim]
    b_lv = params["b_fc"][:, zdim:]
    b3 = jnp.pad(jnp.concatenate([b_mu, b_lv, b_lv], axis=1),
                 ((0, 0), (0, OUT_LANES - 3 * zdim)))

    grid = (n_pad // tm,)
    # NOTE: weights use constant index_maps (stay resident); single-buffering
    # them (pl.Buffered(1)) would shave ~0.7 MiB of VMEM but is not needed.
    out = pl.pallas_call(
        functools.partial(encoder_b_kernel, zdim=zdim),
        out_shape=jax.ShapeDtypeStruct((n_pad, OUT_LANES), jnp.bfloat16),
        grid=grid,
        in_specs=[
            pl.BlockSpec((tm, D_in), lambda i: (i, 0)),        # x rows
            pl.BlockSpec((tm, zdim), lambda i: (i, 0)),        # eps rows (narrow)
            pl.BlockSpec((D_in, H), lambda i: (0, 0)),         # w1 (resident)
            pl.BlockSpec((1, H), lambda i: (0, 0)),            # b1
            pl.BlockSpec((H, H), lambda i: (0, 0)),            # w2
            pl.BlockSpec((1, H), lambda i: (0, 0)),            # b2
            pl.BlockSpec((H, OUT_LANES), lambda i: (0, 0)),    # packed fc weight
            pl.BlockSpec((1, OUT_LANES), lambda i: (0, 0)),    # packed fc bias
        ],
        out_specs=pl.BlockSpec((tm, OUT_LANES), lambda i: (i, 0)),
        compiler_params=pltpu.CompilerParams(
            dimension_semantics=("parallel",),
            vmem_limit_bytes=32 * 1024 * 1024),
    )(x, e, params["w1"], params["b1"], params["w2"], params["b2"], w3, b3)

    # One contiguous slice of the slab, then split (bf16 downstream).
    core = out[:N, :4 * zdim]
    rs = lambda a: a.reshape(S, B, zdim)
    mu = rs(core[:, 0:zdim])
    logvar = rs(core[:, zdim:2 * zdim])
    std = rs(core[:, 2 * zdim:3 * zdim])
    z = rs(core[:, 3 * zdim:4 * zdim])
    return z, mu, logvar, std


def encoder_b_reference(labels, eps, params):
    """Pure-JAX reference with the same bf16-operand / f32-accumulate numerics."""
    S, B, D = labels.shape
    zdim = params["b_fc"].shape[-1] // 2
    x = labels.reshape(S * B, D).astype(jnp.float32)

    def mm(a, w):
        return jnp.dot(a.astype(jnp.bfloat16), w, preferred_element_type=jnp.float32)

    h1 = jnp.maximum(mm(x, params["w1"]) + params["b1"], 0.0)
    h2 = jnp.maximum(mm(h1, params["w2"]) + params["b2"], 0.0)
    stats = mm(h2, params["w_fc"]) + params["b_fc"]
    mu, lv = stats[:, :zdim], stats[:, zdim:]
    std = jnp.sqrt(jnp.exp(lv) + EPS)
    z = mu + std * eps.reshape(S * B, zdim)
    rs = lambda a: a.reshape(S, B, zdim)
    return rs(z), rs(mu), rs(lv), rs(std)


def init_params(seed, num_hidden=512, zShared_dim=10, in_dim=10):
    """Deterministic kaiming-style init (fan_in, ReLU gain), zero biases.
    Weights stored (in, out) in bf16 (MXU operands); biases in f32.
    TODO(synk): PyTorch nn.Linear kaiming_init parity requires importing the
    real torch weights; this is a numerically-equivalent-shape stand-in."""
    key = jax.random.PRNGKey(seed)
    k1, k2, k3 = jax.random.split(key, 3)

    def kaiming(k, fan_in, fan_out):
        std = jnp.sqrt(2.0 / fan_in)
        return (jax.random.normal(k, (fan_in, fan_out), jnp.float32) * std).astype(jnp.bfloat16)

    return {
        "w1": kaiming(k1, in_dim, num_hidden),
        "b1": jnp.zeros((1, num_hidden), jnp.float32),
        "w2": kaiming(k2, num_hidden, num_hidden),
        "b2": jnp.zeros((1, num_hidden), jnp.float32),
        "w_fc": kaiming(k3, num_hidden, 2 * zShared_dim),
        "b_fc": jnp.zeros((1, 2 * zShared_dim), jnp.float32),
    }


if __name__ == "__main__":
    seed = 0
    zShared_dim = 10
    num_samples, batch = 2, 8

    params = init_params(seed, num_hidden=512, zShared_dim=zShared_dim, in_dim=10)

    key = jax.random.PRNGKey(0)
    k_lbl, k_eps = jax.random.split(key)
    # soft digit labels (S, B, 10)
    labels = jax.nn.softmax(
        jax.random.normal(k_lbl, (num_samples, batch, 10), jnp.float32), axis=-1)
    eps = jax.random.normal(k_eps, (num_samples, batch, zShared_dim), jnp.float32)

    # TODO(synk): probtorch.Trace / q.normal bookkeeping has no Pallas equivalent;
    # the reparameterized normal sample is fused in-kernel using the eps above.
    z, mu, logvar, std = encoder_b_forward(labels, eps, params)
    jax.block_until_ready((z, mu, logvar, std))

    z_r, mu_r, lv_r, std_r = encoder_b_reference(labels, eps, params)
    assert z.shape == (num_samples, batch, zShared_dim)
    assert logvar.shape == (num_samples, batch, zShared_dim)
    assert jnp.allclose(mu, mu_r, atol=2e-2, rtol=2e-2)
    assert jnp.allclose(logvar, lv_r, atol=2e-2, rtol=2e-2)
    assert jnp.allclose(std, std_r, atol=2e-2, rtol=2e-2)
    assert jnp.allclose(z, z_r, atol=2e-2, rtol=2e-2)
    print("KERNEL_OK")
</pallas_src>

<mosaic_0001>
module attributes {stable_mosaic.version = 11 : i64} {
  func.func @encoder_b_kernel(%arg0: i32, %arg1: memref<16x10xf32, #tpu.memory_space<vmem>>, %arg2: memref<16x10xf32, #tpu.memory_space<vmem>>, %arg3: memref<10x512xbf16, #tpu.memory_space<vmem>>, %arg4: memref<1x512xf32, #tpu.memory_space<vmem>>, %arg5: memref<512x512xbf16, #tpu.memory_space<vmem>>, %arg6: memref<1x512xf32, #tpu.memory_space<vmem>>, %arg7: memref<512x128xbf16, #tpu.memory_space<vmem>>, %arg8: memref<1x128xf32, #tpu.memory_space<vmem>>, %arg9: memref<16x128xbf16, #tpu.memory_space<vmem>>) attributes {dimension_semantics = [#tpu.dimension_semantics<parallel>], iteration_bounds = array<i64: 1>, scalar_prefetch = 0 : i64, scratch_operands = 0 : i64, tpu.core_type = #tpu.core_type<tc>, window_params = [{transform_indices = @transform_0, window_bounds = array<i64: 16, 10>}, {transform_indices = @transform_1, window_bounds = array<i64: 16, 10>}, {pipeline_mode = #tpu.pipeline_mode<synchronous>, transform_indices = @transform_2, window_bounds = array<i64: 10, 512>}, {pipeline_mode = #tpu.pipeline_mode<synchronous>, transform_indices = @transform_3, window_bounds = array<i64: 1, 512>}, {pipeline_mode = #tpu.pipeline_mode<synchronous>, transform_indices = @transform_4, window_bounds = array<i64: 512, 512>}, {pipeline_mode = #tpu.pipeline_mode<synchronous>, transform_indices = @transform_5, window_bounds = array<i64: 1, 512>}, {pipeline_mode = #tpu.pipeline_mode<synchronous>, transform_indices = @transform_6, window_bounds = array<i64: 512, 128>}, {pipeline_mode = #tpu.pipeline_mode<synchronous>, transform_indices = @transform_7, window_bounds = array<i64: 1, 128>}, {transform_indices = @transform_8, window_bounds = array<i64: 16, 128>}]} {
    %c0 = arith.constant 0 : index
    %c0_0 = arith.constant 0 : index
    %0 = vector.load %arg1[%c0, %c0_0] : memref<16x10xf32, #tpu.memory_space<vmem>>, vector<16x10xf32>
    %1 = arith.truncf %0 : vector<16x10xf32> to vector<16x10xbf16>
    %c0_1 = arith.constant 0 : index
    %c0_2 = arith.constant 0 : index
    %2 = vector.load %arg3[%c0_1, %c0_2] : memref<10x512xbf16, #tpu.memory_space<vmem>>, vector<10x512xbf16>
    %cst = arith.constant dense<0.000000e+00> : vector<16x512xf32>
    %3 = tpu.matmul %1, %2, %cst {dimension_numbers = #tpu.dot_dimension_numbers<[1], [0], [0], [1], [0, 0, 1, 1], [], []>} : vector<16x10xbf16>, vector<10x512xbf16>, vector<16x512xf32> -> vector<16x512xf32>
    %c0_3 = arith.constant 0 : index
    %c0_4 = arith.constant 0 : index
    %4 = vector.load %arg4[%c0_3, %c0_4] : memref<1x512xf32, #tpu.memory_space<vmem>>, vector<1x512xf32>
    %5 = vector.broadcast %4 : vector<1x512xf32> to vector<16x512xf32>
    %6 = arith.addf %3, %5 : vector<16x512xf32>
    %cst_5 = arith.constant 0.000000e+00 : f32
    %7 = vector.broadcast %cst_5 : f32 to vector<16x512xf32>
    %8 = arith.maximumf %6, %7 : vector<16x512xf32>
    %9 = arith.truncf %8 : vector<16x512xf32> to vector<16x512xbf16>
    %c0_6 = arith.constant 0 : index
    %c0_7 = arith.constant 0 : index
    %10 = vector.load %arg5[%c0_6, %c0_7] : memref<512x512xbf16, #tpu.memory_space<vmem>>, vector<512x512xbf16>
    %cst_8 = arith.constant dense<0.000000e+00> : vector<16x512xf32>
    %11 = tpu.matmul %9, %10, %cst_8 {dimension_numbers = #tpu.dot_dimension_numbers<[1], [0], [0], [1], [0, 0, 1, 1], [], []>} : vector<16x512xbf16>, vector<512x512xbf16>, vector<16x512xf32> -> vector<16x512xf32>
    %c0_9 = arith.constant 0 : index
    %c0_10 = arith.constant 0 : index
    %12 = vector.load %arg6[%c0_9, %c0_10] : memref<1x512xf32, #tpu.memory_space<vmem>>, vector<1x512xf32>
    %13 = vector.broadcast %12 : vector<1x512xf32> to vector<16x512xf32>
    %14 = arith.addf %11, %13 : vector<16x512xf32>
    %cst_11 = arith.constant 0.000000e+00 : f32
    %15 = vector.broadcast %cst_11 : f32 to vector<16x512xf32>
    %16 = arith.maximumf %14, %15 : vector<16x512xf32>
    %17 = arith.truncf %16 : vector<16x512xf32> to vector<16x512xbf16>
    %c0_12 = arith.constant 0 : index
    %c0_13 = arith.constant 0 : index
    %18 = vector.load %arg7[%c0_12, %c0_13] : memref<512x128xbf16, #tpu.memory_space<vmem>>, vector<512x128xbf16>
    %cst_14 = arith.constant dense<0.000000e+00> : vector<16x128xf32>
    %19 = tpu.matmul %17, %18, %cst_14 {dimension_numbers = #tpu.dot_dimension_numbers<[1], [0], [0], [1], [0, 0, 1, 1], [], []>} : vector<16x512xbf16>, vector<512x128xbf16>, vector<16x128xf32> -> vector<16x128xf32>
    %c0_15 = arith.constant 0 : index
    %c0_16 = arith.constant 0 : index
    %20 = vector.load %arg8[%c0_15, %c0_16] : memref<1x128xf32, #tpu.memory_space<vmem>>, vector<1x128xf32>
    %21 = vector.broadcast %20 : vector<1x128xf32> to vector<16x128xf32>
    %22 = arith.addf %19, %21 : vector<16x128xf32>
    %23 = tpu.iota {dimensions = array<i32: 1>} : vector<16x128xi32>
    %c10_i32 = arith.constant 10 : i32
    %24 = vector.broadcast %c10_i32 : i32 to vector<16x128xi32>
    %25 = arith.cmpi sge, %23, %24 : vector<16x128xi32>
    %c30_i32 = arith.constant 30 : i32
    %26 = vector.broadcast %c30_i32 : i32 to vector<16x128xi32>
    %27 = arith.cmpi slt, %23, %26 : vector<16x128xi32>
    %28 = arith.andi %25, %27 : vector<16x128xi1>
    %c20_i32 = arith.constant 20 : i32
    %29 = vector.broadcast %c20_i32 : i32 to vector<16x128xi32>
    %30 = arith.cmpi sge, %23, %29 : vector<16x128xi32>
    %c30_i32_17 = arith.constant 30 : i32
    %31 = vector.broadcast %c30_i32_17 : i32 to vector<16x128xi32>
    %32 = arith.cmpi slt, %23, %31 : vector<16x128xi32>
    %33 = arith.andi %30, %32 : vector<16x128xi1>
    %cst_18 = arith.constant 0.000000e+00 : f32
    %34 = vector.broadcast %cst_18 : f32 to vector<16x128xf32>
    %35 = arith.select %28, %22, %34 : vector<16x128xi1>, vector<16x128xf32>
    %36 = math.exp %35 : vector<16x128xf32>
    %cst_19 = arith.constant 9.99999971E-10 : f32
    %37 = vector.broadcast %cst_19 : f32 to vector<16x128xf32>
    %38 = arith.addf %36, %37 : vector<16x128xf32>
    %39 = math.sqrt %38 : vector<16x128xf32>
    %40 = arith.select %33, %39, %22 : vector<16x128xi1>, vector<16x128xf32>
    %41 = arith.truncf %40 : vector<16x128xf32> to vector<16x128xbf16>
    %c0_20 = arith.constant 0 : index
    %c0_21 = arith.constant 0 : index
    %42 = vector.load %arg9[%c0_20, %c0_21] : memref<16x128xbf16, #tpu.memory_space<vmem>>, vector<16x128xbf16>
    tpu.vector_store %arg9[%c0_20, %c0_21], %41 {strides = array<i32>} : memref<16x128xbf16, #tpu.memory_space<vmem>>, vector<16x128xbf16>,
    %c0_22 = arith.constant 0 : index
    %c0_23 = arith.constant 0 : index
    %43 = vector.load %arg9[%c0_22, %c0_23] : memref<16x128xbf16, #tpu.memory_space<vmem>>, vector<16x10xbf16>
    %44 = arith.extf %43 : vector<16x10xbf16> to vector<16x10xf32>
    %c0_24 = arith.constant 0 : index
    %c20 = arith.constant 20 : index
    %45 = vector.load %arg9[%c0_24, %c20] : memref<16x128xbf16, #tpu.memory_space<vmem>>, vector<16x10xbf16>
    %46 = arith.extf %45 : vector<16x10xbf16> to vector<16x10xf32>
    %c0_25 = arith.constant 0 : index
    %c0_26 = arith.constant 0 : index
    %47 = vector.load %arg2[%c0_25, %c0_26] : memref<16x10xf32, #tpu.memory_space<vmem>>, vector<16x10xf32>
    %48 = arith.mulf %46, %47 : vector<16x10xf32>
    %49 = arith.addf %44, %48 : vector<16x10xf32>
    %50 = arith.truncf %49 : vector<16x10xf32> to vector<16x10xbf16>
    %c0_27 = arith.constant 0 : index
    %c30 = arith.constant 30 : index
    %51 = vector.load %arg9[%c0_27, %c30] : memref<16x128xbf16, #tpu.memory_space<vmem>>, vector<16x10xbf16>
    tpu.vector_store %arg9[%c0_27, %c30], %50 {strides = array<i32>} : memref<16x128xbf16, #tpu.memory_space<vmem>>, vector<16x10xbf16>,
    return
  }
  func.func @transform_0(%arg0: i32) -> (i32, i32) {
    %c0_i32 = arith.constant 0 : i32
    %c0_i32_0 = arith.constant 0 : i32
    return %arg0, %c0_i32 : i32, i32
  }
  func.func @transform_1(%arg0: i32) -> (i32, i32) {
    %c0_i32 = arith.constant 0 : i32
    %c0_i32_0 = arith.constant 0 : i32
    return %arg0, %c0_i32 : i32, i32
  }
  func.func @transform_2(%arg0: i32) -> (i32, i32) {
    %c0_i32 = arith.constant 0 : i32
    %c0_i32_0 = arith.constant 0 : i32
    %c0_i32_1 = arith.constant 0 : i32
    return %c0_i32, %c0_i32_0 : i32, i32
  }
  func.func @transform_3(%arg0: i32) -> (i32, i32) {
    %c0_i32 = arith.constant 0 : i32
    %c0_i32_0 = arith.constant 0 : i32
    %c0_i32_1 = arith.constant 0 : i32
    return %c0_i32, %c0_i32_0 : i32, i32
  }
  func.func @transform_4(%arg0: i32) -> (i32, i32) {
    %c0_i32 = arith.constant 0 : i32
    %c0_i32_0 = arith.constant 0 : i32
    %c0_i32_1 = arith.constant 0 : i32
    return %c0_i32, %c0_i32_0 : i32, i32
  }
  func.func @transform_5(%arg0: i32) -> (i32, i32) {
    %c0_i32 = arith.constant 0 : i32
    %c0_i32_0 = arith.constant 0 : i32
    %c0_i32_1 = arith.constant 0 : i32
    return %c0_i32, %c0_i32_0 : i32, i32
  }
  func.func @transform_6(%arg0: i32) -> (i32, i32) {
    %c0_i32 = arith.constant 0 : i32
    %c0_i32_0 = arith.constant 0 : i32
    %c0_i32_1 = arith.constant 0 : i32
    return %c0_i32, %c0_i32_0 : i32, i32
  }
  func.func @transform_7(%arg0: i32) -> (i32, i32) {
    %c0_i32 = arith.constant 0 : i32
    %c0_i32_0 = arith.constant 0 : i32
    %c0_i32_1 = arith.constant 0 : i32
    return %c0_i32, %c0_i32_0 : i32, i32
  }
  func.func @transform_8(%arg0: i32) -> (i32, i32) {
    %c0_i32 = arith.constant 0 : i32
    %c0_i32_0 = arith.constant 0 : i32
    return %arg0, %c0_i32 : i32, i32
  }
}

</mosaic_0001>

<bundles_post_ra>
// kernel: encoder_b_forward.1
= control target key start
LH: loop header
LB: loop body
LE: loop exit
PB: predicated region body
PF: predicated region fallthrough
CT: control target
= control target key end

     0   :  { %13 = vsyncpa [#allocation3], 0  ;;  %s2830_s0 = inlined_call_operand.hbm [shape: f32[16,10], index: 0, kind: input, shape index: {}]   ;;  %s2831_s1 = inlined_call_operand.hbm [shape: f32[16,10], index: 1, kind: input, shape index: {}]   ;;  %s2832_s2 = inlined_call_operand.hbm [shape: bf16[10,512], index: 2, kind: input, shape index: {}]   ;;  %s2833_s3 = inlined_call_operand.vmem [shape: f32[1,512], index: 3, kind: input, shape index: {}]   ;;  %s2834_s4 = inlined_call_operand.vmem [shape: bf16[512,512], index: 4, kind: input, shape index: {}]   ;;  %s2835_s5 = inlined_call_operand.vmem [shape: f32[1,512], index: 5, kind: input, shape index: {}]   ;;  %s2836_s6 = inlined_call_operand.vmem [shape: bf16[512,128], index: 6, kind: input, shape index: {}]   ;;  %s2837_s7 = inlined_call_operand.vmem [shape: f32[1,128], index: 7, kind: input, shape index: {}]   ;;  %s2838_s8 = inlined_call_operand.vmem [shape: bf16[16,128], index: 8, kind: output, shape index: {}]  }
   0x1   :  { %14 = vsyncpa [#allocation5], 0  ;;  %s2203_s27 = smov [#allocation4]   ;;  %s2204_s29 = smov [#allocation2]  }
   0x2   :  { %s32_s28 = sshll.u32 %s2203_s27, 4  ;;  %s20_s30 = sshll.u32 %s2204_s29, 4  ;;  %s33_s28 = int_to_ptr.vmem [resolvable:$true] %s32_s28  ;;  %s2259_s30 = int_to_ptr.vmem [resolvable:$true] %s20_s30 }
   0x3   :  { %s2133_s11 = scalar_lea.hbm %s2831_s1, 256 }
   0x4   :  { %p2134_p0 = scmp.ne.s32.totalorder %s2831_s1, %s2133_s11  ;;  %p2137_p1 = scmp.lt.u32.totalorder %s2133_s11, %s2831_s1 }
   0x6   :  { %p2139_p2 = pnand %p2137_p1, %p2134_p0 }
   0x8   :  { %2142 = shalt.err (!%p2139_p2)
}
   0x9   :  { %s2143_s16 = scalar_lea.vmem %s33_s28, 256  ;;  %p2148_p4 = scmp.lt.s32.totalorder %s33_s28, %s33_s28 }
   0xa   :  { %p2144_p3 = scmp.ne.s32.totalorder %s33_s28, %s2143_s16  ;;  %p2149_p5 = scmp.lt.s32.totalorder %s2143_s16, %s2143_s16 }
   0xc   :  { %p2150_p6 = por %p2149_p5, %p2148_p4 }
   0xe   :  { %p2151_p7 = pnand %p2150_p6, %p2144_p3 }
  0x10   :  { %2154 = shalt.err (!%p2151_p7)
}
  0x11   :  { %s2205_s17 = smov 128   ;;  %s2206_s18 = smov 8  }
  0x12   :  { %38 = dma.hbm_to_vmem [thread:$0]  %s2831_s1, 256, %s33_s28, [#allocation5], %s2205_s17, %s2205_s17, %s2206_s18  }
  0x13   :  { %s2155_s23 = scalar_lea.hbm %s2830_s0, 256 }
  0x14   :  { %p2156_p8 = scmp.ne.s32.totalorder %s2830_s0, %s2155_s23  ;;  %p2159_p9 = scmp.lt.u32.totalorder %s2155_s23, %s2830_s0 }
  0x16   :  { %p2161_p10 = pnand %p2159_p9, %p2156_p8 }
  0x18   :  { %2164 = shalt.err (!%p2161_p10)
}
  0x19   :  { %s2165_s29 = scalar_lea.vmem %s2259_s30, 256  ;;  %p2170_p12 = scmp.lt.s32.totalorder %s2259_s30, %s2259_s30 }
  0x1a   :  { %p2166_p11 = scmp.ne.s32.totalorder %s2259_s30, %s2165_s29  ;;  %p2171_p13 = scmp.lt.s32.totalorder %s2165_s29, %s2165_s29 }
  0x1c   :  { %p2172_p0 = por %p2171_p13, %p2170_p12 }
  0x1e   :  { %p2173_p1 = pnand %p2172_p0, %p2166_p11 }
  0x20   :  { %2176 = shalt.err (!%p2173_p1)
}
  0x21   :  { %26 = dma.hbm_to_vmem [thread:$0]  %s2830_s0, 256, %s2259_s30, [#allocation3], %s2205_s17, %s2205_s17, %s2206_s18  }
  0x22   :  { %s2207_s9 = smov [#allocation6]   ;;  %s2177_s13 = scalar_lea.hbm %s2832_s2, 512 }
  0x23   :  { %s44_s10 = sshll.u32 %s2207_s9, 4  ;;  %p2178_p2 = scmp.ne.s32.totalorder %s2832_s2, %s2177_s13  ;;  %s45_s10 = int_to_ptr.vmem [resolvable:$true] %s44_s10 }
  0x24   :  { %p2181_p3 = scmp.lt.u32.totalorder %s2177_s13, %s2832_s2 }
  0x26   :  { %p2183_p4 = pnand %p2181_p3, %p2178_p2 }
  0x28   :  { %2186 = shalt.err (!%p2183_p4)
}
  0x29   :  { %s2187_s20 = scalar_lea.vmem %s45_s10, 512  ;;  %p2192_p6 = scmp.lt.s32.totalorder %s45_s10, %s45_s10 }
  0x2a   :  { %p2188_p5 = scmp.ne.s32.totalorder %s45_s10, %s2187_s20  ;;  %p2193_p7 = scmp.lt.s32.totalorder %s2187_s20, %s2187_s20 }
  0x2c   :  { %p2194_p8 = por %p2193_p7, %p2192_p6 }
  0x2e   :  { %p2195_p9 = pnand %p2194_p8, %p2188_p5 }
  0x30   :  { %2198 = shalt.err (!%p2195_p9)
}
  0x31   :  { %s2208_s0 = smov 256   ;;  %s2209_s30 = smov 16  }
  0x32   :  { %50 = dma.hbm_to_vmem [thread:$0]  %s2832_s2, 512, %s45_s10, [#allocation5], %s2208_s0, %s2208_s0, %s2209_s30  }
  0x33   :  { %2199 = dma.done.wait [#allocation3], 256  }
  0x34   :  { %2200 = vsyncadd [#allocation3], 4294967040 }
  0x35   :  { %2201 = dma.done.wait [#allocation5], 768  }
  0x36   :  { %2202 = vsyncadd [#allocation5], 4294966528  ;;  %v2210_v0 = vmov 0   ;;  %vm120_vm0 = vcmask 1044480   ;;  %v71_v3 = vld [vmem:[#allocation2] sm:$0xff]  ;;  %v72_v4 = vld [vmem:[#allocation2 + $0x8] sm:$0xff] }
  0x37   :  { %165 = vmatprep.mubr.bf16.mxu0 %v2210_v0  ;;  %208 = vmatprep.mubr.bf16.mxu1 %v2210_v0  ;;  %v1895_v1 = vld [vmem:[#allocation6 + $0x4] ss:$16 sps:$4 sm:$0x1f]   ;;  %v1897_v2 = vld [vmem:[#allocation6] ss:$16 sps:$4 sm:$0x1f]   ;;  %v73_v7 = vpack.c.bf16 %v72_v4, %v71_v3 }
  0x38   :  { %1642 = vmatprep.subr.msk.bf16.mxu0 %vm120_vm0, %v1895_v1  ;;  %v1898_v5 = vld [vmem:[#allocation6 + $0xc] ss:$16 sps:$4 sm:$0x1f]   ;;  %v122_v6 = vsel %vm120_vm0, %v1897_v2, 0  ;;  %vm116_vm1 = vcmask 80896   ;;  %s2211_s9 = smov 20  }
  0x39   :  { %v1900_v8 = vld [vmem:[#allocation6 + $0x8] ss:$16 sps:$4 sm:$0x1f]   ;;  %134 = vmatpush1.bf16.msra.mxu0 %v122_v6  ;;  %1644 = vmatprep.subr.msk.bf16.mxu1 %vm120_vm0, %v1898_v5  ;;  %v1901_v9 = vld [vmem:[%s2834_s4] ss:$16 sps:$4 sm:$0xff]   ;;  %s2212_s13 = smov 108  }
  0x3a   :  { %v1903_v10 = vld [vmem:[%s2834_s4 + $0x4] ss:$16 sps:$4 sm:$0xff]   ;;  %v128_v11 = vsel %vm120_vm0, %v1900_v8, 0  ;;  %v1906_v12 = vld [vmem:[%s2834_s4 + $0xc] ss:$16 sps:$4 sm:$0xff]   ;;  %s2213_s14 = smov 30  }
  0x3b   :  { %177 = vmatpush1.bf16.msra.mxu1 %v128_v11  ;;  %1021 = vmatprep.subr.bf16.mxu0 %v1903_v10  ;;  %v1904_v13 = vld [vmem:[%s2834_s4 + $0x8] ss:$16 sps:$4 sm:$0xff]   ;;  %v1909_v14 = vld [vmem:[%s2834_s4 + $0x24] ss:$16 sps:$4 sm:$0xff]   ;;  %v1907_v15 = vld [vmem:[%s2834_s4 + $0x20] ss:$16 sps:$4 sm:$0xff]  }
  0x3c   :  { %1643 = vmatmul.mubr.msk.bf16.vlgmr.msra.gmra.mrb[0].mxu0 %vm116_vm1, %v73_v7  ;;  %1107 = vmatprep.subr.bf16.mxu1 %v1906_v12  ;;  %v1912_v16 = vld [vmem:[%s2834_s4 + $0x2c] ss:$16 sps:$4 sm:$0xff]   ;;  %v1915_v17 = vld [vmem:[%s2834_s4 + $0x44] ss:$16 sps:$4 sm:$0xff]   ;;  %v1910_v18 = vld [vmem:[%s2834_s4 + $0x28] ss:$16 sps:$4 sm:$0xff]   ;;  %v80_v12 = vlaneseq }
  0x3d   :  { %1022 = vmatpush1.bf16.msra.mxu0 %v1901_v9  ;;  %v1918_v19 = vld [vmem:[%s2834_s4 + $0x4c] ss:$16 sps:$4 sm:$0xff]   ;;  %v1913_v20 = vld [vmem:[%s2834_s4 + $0x40] ss:$16 sps:$4 sm:$0xff]   ;;  %v1921_v21 = vld [vmem:[%s2834_s4 + $0x64] ss:$16 sps:$4 sm:$0xff]  }
  0x3e   :  { %1645 = vmatmul.mubr.msk.bf16.vlgmr.msra.gmra.mrb[0].mxu1 %vm116_vm1, %v73_v7  ;;  %1023 = vmatprep.subr.bf16.mxu0 %v1909_v14  ;;  %v1916_v22 = vld [vmem:[%s2834_s4 + $0x48] ss:$16 sps:$4 sm:$0xff]   ;;  %v1924_v23 = vld [vmem:[%s2834_s4 + $0x6c] ss:$16 sps:$4 sm:$0xff]   ;;  %v1919_v24 = vld [vmem:[%s2834_s4 + $0x60] ss:$16 sps:$4 sm:$0xff]  }
  0x3f   :  { %1108 = vmatpush1.bf16.msra.mxu1 %v1904_v13  ;;  %v1927_v25 = vld [vmem:[%s2834_s4 + $0x84] ss:$16 sps:$4 sm:$0xff]   ;;  %v1922_v26 = vld [vmem:[%s2834_s4 + $0x68] ss:$16 sps:$4 sm:$0xff]   ;;  %v1930_v27 = vld [vmem:[%s2834_s4 + $0x8c] ss:$16 sps:$4 sm:$0xff]  }
  0x40   :  { %1109 = vmatprep.subr.bf16.mxu1 %v1912_v16  ;;  %v1925_v28 = vld [vmem:[%s2834_s4 + $0x80] ss:$16 sps:$4 sm:$0xff]   ;;  %v1933_v29 = vld [vmem:[%s2834_s4 + $0xa4] ss:$16 sps:$4 sm:$0xff]   ;;  %v1928_v30 = vld [vmem:[%s2834_s4 + $0x88] ss:$16 sps:$4 sm:$0xff]  }
  0x41   :  { %1024 = vmatpush1.bf16.msra.mxu0 %v1907_v15  ;;  %v1936_v31 = vld [vmem:[%s2834_s4 + $0xac] ss:$16 sps:$4 sm:$0xff]   ;;  %v1931_v32 = vld [vmem:[%s2834_s4 + $0xa0] ss:$16 sps:$4 sm:$0xff]   ;;  %v1939_v33 = vld [vmem:[%s2834_s4 + $0xc4] ss:$16 sps:$4 sm:$0xff]  }
  0x42   :  { %1025 = vmatprep.subr.bf16.mxu0 %v1915_v17  ;;  %v1934_v34 = vld [vmem:[%s2834_s4 + $0xa8] ss:$16 sps:$4 sm:$0xff]   ;;  %v1942_v35 = vld [vmem:[%s2834_s4 + $0xcc] ss:$16 sps:$4 sm:$0xff]   ;;  %v1937_v36 = vld [vmem:[%s2834_s4 + $0xc0] ss:$16 sps:$4 sm:$0xff]  }
  0x43   :  { %1110 = vmatpush1.bf16.msra.mxu1 %v1910_v18  ;;  %v1945_v37 = vld [vmem:[%s2834_s4 + $0xe4] ss:$16 sps:$4 sm:$0xff]   ;;  %v1940_v38 = vld [vmem:[%s2834_s4 + $0xc8] ss:$16 sps:$4 sm:$0xff]   ;;  %v1948_v39 = vld [vmem:[%s2834_s4 + $0xec] ss:$16 sps:$4 sm:$0xff]  }
  0x44   :  { %1111 = vmatprep.subr.bf16.mxu1 %v1918_v19  ;;  %v1943_v40 = vld [vmem:[%s2834_s4 + $0xe0] ss:$16 sps:$4 sm:$0xff]   ;;  %v1951_v41 = vld [vmem:[%s2834_s4 + $0x104] ss:$16 sps:$4 sm:$0xff]   ;;  %v1946_v42 = vld [vmem:[%s2834_s4 + $0xe8] ss:$16 sps:$4 sm:$0xff]  }
  0x45   :  { %1026 = vmatpush1.bf16.msra.mxu0 %v1913_v20  ;;  %v1954_v43 = vld [vmem:[%s2834_s4 + $0x10c] ss:$16 sps:$4 sm:$0xff]   ;;  %v1949_v44 = vld [vmem:[%s2834_s4 + $0x100] ss:$16 sps:$4 sm:$0xff]   ;;  %v1957_v45 = vld [vmem:[%s2834_s4 + $0x124] ss:$16 sps:$4 sm:$0xff]  }
  0x46   :  { %1027 = vmatprep.subr.bf16.mxu0 %v1921_v21  ;;  %v1952_v46 = vld [vmem:[%s2834_s4 + $0x108] ss:$16 sps:$4 sm:$0xff]   ;;  %v1960_v47 = vld [vmem:[%s2834_s4 + $0x12c] ss:$16 sps:$4 sm:$0xff]   ;;  %v1955_v48 = vld [vmem:[%s2834_s4 + $0x120] ss:$16 sps:$4 sm:$0xff]  }
  0x47   :  { %1112 = vmatpush1.bf16.msra.mxu1 %v1916_v22  ;;  %v1958_v49 = vld [vmem:[%s2834_s4 + $0x128] ss:$16 sps:$4 sm:$0xff]   ;;  %v1963_v50 = vld [vmem:[%s2834_s4 + $0x144] ss:$16 sps:$4 sm:$0xff]   ;;  %v1966_v51 = vld [vmem:[%s2834_s4 + $0x14c] ss:$16 sps:$4 sm:$0xff]  }
  0x48   :  { %1113 = vmatprep.subr.bf16.mxu1 %v1924_v23  ;;  %v1961_v52 = vld [vmem:[%s2834_s4 + $0x140] ss:$16 sps:$4 sm:$0xff]   ;;  %v1969_v53 = vld [vmem:[%s2834_s4 + $0x164] ss:$16 sps:$4 sm:$0xff]   ;;  %v1964_v54 = vld [vmem:[%s2834_s4 + $0x148] ss:$16 sps:$4 sm:$0xff]  }
  0x49   :  { %1028 = vmatpush1.bf16.msra.mxu0 %v1919_v24  ;;  %v1972_v55 = vld [vmem:[%s2834_s4 + $0x16c] ss:$16 sps:$4 sm:$0xff]   ;;  %v1967_v56 = vld [vmem:[%s2834_s4 + $0x160] ss:$16 sps:$4 sm:$0xff]   ;;  %v1975_v57 = vld [vmem:[%s2834_s4 + $0x184] ss:$16 sps:$4 sm:$0xff]  }
  0x4a   :  { %1029 = vmatprep.subr.bf16.mxu0 %v1927_v25  ;;  %v1970_v58 = vld [vmem:[%s2834_s4 + $0x168] ss:$16 sps:$4 sm:$0xff]   ;;  %v1978_v59 = vld [vmem:[%s2834_s4 + $0x18c] ss:$16 sps:$4 sm:$0xff]   ;;  %v1973_v60 = vld [vmem:[%s2834_s4 + $0x180] ss:$16 sps:$4 sm:$0xff]  }
  0x4b   :  { %1114 = vmatpush1.bf16.msra.mxu1 %v1922_v26  ;;  %v1981_v61 = vld [vmem:[%s2834_s4 + $0x1a4] ss:$16 sps:$4 sm:$0xff]   ;;  %v1976_v62 = vld [vmem:[%s2834_s4 + $0x188] ss:$16 sps:$4 sm:$0xff]   ;;  %v1984_v63 = vld [vmem:[%s2834_s4 + $0x1ac] ss:$16 sps:$4 sm:$0xff]  }
  0x4c   :  { %1115 = vmatprep.subr.bf16.mxu1 %v1930_v27  ;;  %v1979_v0 = vld [vmem:[%s2834_s4 + $0x1a0] ss:$16 sps:$4 sm:$0xff]   ;;  %v1982_v1 = vld [vmem:[%s2834_s4 + $0x1a8] ss:$16 sps:$4 sm:$0xff]   ;;  %v1987_v2 = vld [vmem:[%s2834_s4 + $0x1c4] ss:$16 sps:$4 sm:$0xff]  }
  0x4d   :  { %1030 = vmatpush1.bf16.msra.mxu0 %v1925_v28  ;;  %v1990_v3 = vld [vmem:[%s2834_s4 + $0x1cc] ss:$16 sps:$4 sm:$0xff]   ;;  %v1985_v4 = vld [vmem:[%s2834_s4 + $0x1c0] ss:$16 sps:$4 sm:$0xff]   ;;  %v1988_v5 = vld [vmem:[%s2834_s4 + $0x1c8] ss:$16 sps:$4 sm:$0xff]  }
  0x4e   :  { %1031 = vmatprep.subr.bf16.mxu0 %v1933_v29  ;;  %v1993_v6 = vld [vmem:[%s2834_s4 + $0x1e4] ss:$16 sps:$4 sm:$0xff]   ;;  %v1996_v7 = vld [vmem:[%s2834_s4 + $0x1ec] ss:$16 sps:$4 sm:$0xff]   ;;  %v1991_v8 = vld [vmem:[%s2834_s4 + $0x1e0] ss:$16 sps:$4 sm:$0xff]  }
  0x4f   :  { %1116 = vmatpush1.bf16.msra.mxu1 %v1928_v30  ;;  %v1994_v9 = vld [vmem:[%s2834_s4 + $0x1e8] ss:$16 sps:$4 sm:$0xff]   ;;  %v1999_v10 = vld [vmem:[%s2834_s4 + $0x204] ss:$16 sps:$4 sm:$0xff]   ;;  %v2002_v11 = vld [vmem:[%s2834_s4 + $0x20c] ss:$16 sps:$4 sm:$0xff]  }
  0x50   :  { %1117 = vmatprep.subr.bf16.mxu1 %v1936_v31  ;;  %v2501_v13 = vshrl.u32 %v80_v12, 7  ;;  %v78_v15 = vld [vmem:[%s2833_s3] sm:$0xf]  ;;  %vm1629_vm11 = vcmask 322800  }
  0x51   :  { %1032 = vmatpush1.bf16.msra.mxu0 %v1931_v32 }
  0x52   :  { %1033 = vmatprep.subr.bf16.mxu0 %v1939_v33  ;;  %v82_v14 = vsub.s32 0, %v2501_v13  ;;  %v86_v16 = vsub.s32 1, %v2501_v13  ;;  %v90_v17 = vsub.s32 2, %v2501_v13  ;;  %v94_v18 = vsub.s32 3, %v2501_v13 }
  0x53   :  { %1118 = vmatpush1.bf16.msra.mxu1 %v1934_v34 }
  0x54   :  { %1119 = vmatprep.subr.bf16.mxu1 %v1942_v35  ;;  %v83_v19 = vrot.slane %v78_v15, %v82_v14  ;;  %v87_v20 = vrot.slane %v78_v15, %v86_v16  ;;  %v91_v21 = vrot.slane %v78_v15, %v90_v17  ;;  %v95_v23 = vrot.slane %v78_v15, %v94_v18  ;;  %v2036_v15 = vld [vmem:[%s2834_s4 + $0x2c8] ss:$16 sps:$4 sm:$0xff]  }
  0x55   :  { %1034 = vmatpush1.bf16.msra.mxu0 %v1937_v36 }
  0x56   :  { %1035 = vmatprep.subr.bf16.mxu0 %v1945_v37 }
  0x57   :  { %1120 = vmatpush1.bf16.msra.mxu1 %v1940_v38 }
  0x58   :  { %1121 = vmatprep.subr.bf16.mxu1 %v1948_v39 }
  0x59   :  { %1036 = vmatpush1.bf16.msra.mxu0 %v1943_v40 }
  0x5a   :  { %1037 = vmatprep.subr.bf16.mxu0 %v1951_v41 }
  0x5b   :  { %1122 = vmatpush1.bf16.msra.mxu1 %v1946_v42 }
  0x5c   :  { %1123 = vmatprep.subr.bf16.mxu1 %v1954_v43 }
  0x5d   :  { %1038 = vmatpush1.bf16.msra.mxu0 %v1949_v44 }
  0x5e   :  { %1039 = vmatprep.subr.bf16.mxu0 %v1957_v45 }
  0x5f   :  { %1124 = vmatpush1.bf16.msra.mxu1 %v1952_v46 }
  0x60   :  { %1125 = vmatprep.subr.bf16.mxu1 %v1960_v47 }
  0x61   :  { %1040 = vmatpush1.bf16.msra.mxu0 %v1955_v48  ;;  %v1997_v48 = vld [vmem:[%s2834_s4 + $0x200] ss:$16 sps:$4 sm:$0xff]  }
  0x62   :  { %1041 = vmatprep.subr.bf16.mxu0 %v1963_v50 }
  0x63   :  { %1126 = vmatpush1.bf16.msra.mxu1 %v1958_v49  ;;  %v2000_v49 = vld [vmem:[%s2834_s4 + $0x208] ss:$16 sps:$4 sm:$0xff]  }
  0x64   :  { %1127 = vmatprep.subr.bf16.mxu1 %v1966_v51  ;;  %v2005_v51 = vld [vmem:[%s2834_s4 + $0x224] ss:$16 sps:$4 sm:$0xff]  }
  0x65   :  { %1042 = vmatpush1.bf16.msra.mxu0 %v1961_v52  ;;  %v2008_v52 = vld [vmem:[%s2834_s4 + $0x22c] ss:$16 sps:$4 sm:$0xff]  }
  0x66   :  { %1043 = vmatprep.subr.bf16.mxu0 %v1969_v53 }
  0x67   :  { %1128 = vmatpush1.bf16.msra.mxu1 %v1964_v54 }
  0x68   :  { %1129 = vmatprep.subr.bf16.mxu1 %v1972_v55  ;;  %v2003_v55 = vld [vmem:[%s2834_s4 + $0x220] ss:$16 sps:$4 sm:$0xff]  }
  0x69   :  { %1044 = vmatpush1.bf16.msra.mxu0 %v1967_v56  ;;  %v2006_v56 = vld [vmem:[%s2834_s4 + $0x228] ss:$16 sps:$4 sm:$0xff]  }
  0x6a   :  { %1045 = vmatprep.subr.bf16.mxu0 %v1975_v57  ;;  %v2011_v57 = vld [vmem:[%s2834_s4 + $0x244] ss:$16 sps:$4 sm:$0xff]  }
  0x6b   :  { %1130 = vmatpush1.bf16.msra.mxu1 %v1970_v58  ;;  %v2014_v58 = vld [vmem:[%s2834_s4 + $0x24c] ss:$16 sps:$4 sm:$0xff]  }
  0x6c   :  { %1131 = vmatprep.subr.bf16.mxu1 %v1978_v59  ;;  %v2009_v59 = vld [vmem:[%s2834_s4 + $0x240] ss:$16 sps:$4 sm:$0xff]  }
  0x6d   :  { %1046 = vmatpush1.bf16.msra.mxu0 %v1973_v60  ;;  %v2012_v60 = vld [vmem:[%s2834_s4 + $0x248] ss:$16 sps:$4 sm:$0xff]  }
  0x6e   :  { %1047 = vmatprep.subr.bf16.mxu0 %v1981_v61  ;;  %v2017_v61 = vld [vmem:[%s2834_s4 + $0x264] ss:$16 sps:$4 sm:$0xff]  }
  0x6f   :  { %1132 = vmatpush1.bf16.msra.mxu1 %v1976_v62  ;;  %v2020_v62 = vld [vmem:[%s2834_s4 + $0x26c] ss:$16 sps:$4 sm:$0xff]  }
  0x70   :  { %1133 = vmatprep.subr.bf16.mxu1 %v1984_v63  ;;  %v2015_v63 = vld [vmem:[%s2834_s4 + $0x260] ss:$16 sps:$4 sm:$0xff]  }
  0x71   :  { %1048 = vmatpush1.bf16.msra.mxu0 %v1979_v0  ;;  %v2018_v0 = vld [vmem:[%s2834_s4 + $0x268] ss:$16 sps:$4 sm:$0xff]  }
  0x72   :  { %1049 = vmatprep.subr.bf16.mxu0 %v1987_v2  ;;  %v2026_v2 = vld [vmem:[%s2834_s4 + $0x28c] ss:$16 sps:$4 sm:$0xff]  }
  0x73   :  { %1134 = vmatpush1.bf16.msra.mxu1 %v1982_v1  ;;  %v2023_v1 = vld [vmem:[%s2834_s4 + $0x284] ss:$16 sps:$4 sm:$0xff]  }
  0x74   :  { %1135 = vmatprep.subr.bf16.mxu1 %v1990_v3  ;;  %v2021_v3 = vld [vmem:[%s2834_s4 + $0x280] ss:$16 sps:$4 sm:$0xff]  }
  0x75   :  { %1050 = vmatpush1.bf16.msra.mxu0 %v1985_v4  ;;  %v2024_v4 = vld [vmem:[%s2834_s4 + $0x288] ss:$16 sps:$4 sm:$0xff]  }
  0x76   :  { %1051 = vmatprep.subr.bf16.mxu0 %v1993_v6  ;;  %v2032_v6 = vld [vmem:[%s2834_s4 + $0x2ac] ss:$16 sps:$4 sm:$0xff]  }
  0x77   :  { %1136 = vmatpush1.bf16.msra.mxu1 %v1988_v5  ;;  %v2029_v5 = vld [vmem:[%s2834_s4 + $0x2a4] ss:$16 sps:$4 sm:$0xff]  }
  0x78   :  { %1137 = vmatprep.subr.bf16.mxu1 %v1996_v7  ;;  %v2027_v7 = vld [vmem:[%s2834_s4 + $0x2a0] ss:$16 sps:$4 sm:$0xff]  }
  0x79   :  { %1052 = vmatpush1.bf16.msra.mxu0 %v1991_v8  ;;  %v2030_v8 = vld [vmem:[%s2834_s4 + $0x2a8] ss:$16 sps:$4 sm:$0xff]  }
  0x7a   :  { %1064 = vmatprep.subr.bf16.mxu0 %v1999_v10  ;;  %v2038_v10 = vld [vmem:[%s2834_s4 + $0x2cc] ss:$16 sps:$4 sm:$0xff]  }
  0x7b   :  { %1138 = vmatpush1.bf16.msra.mxu1 %v1994_v9  ;;  %v2035_v9 = vld [vmem:[%s2834_s4 + $0x2c4] ss:$16 sps:$4 sm:$0xff]  }
  0x7c   :  { %1150 = vmatprep.subr.bf16.mxu1 %v2002_v11  ;;  %v2033_v11 = vld [vmem:[%s2834_s4 + $0x2c0] ss:$16 sps:$4 sm:$0xff]  }
 0x10f   :  { %v167_v22 = vpop.f32.mrb[0].mxu0 }
 0x110   :  { %v168_v24 = vadd.f32 %v167_v22, %v83_v19  ;;  %v169_v25 = vpop.f32.mrb[1].mxu0  ;;  %v2042_v22 = vld [vmem:[%s2834_s4 + $0x2e8] ss:$16 sps:$4 sm:$0xff]  }
 0x111   :  { %v170_v26 = vadd.f32 %v169_v25, %v87_v20  ;;  %v171_v27 = vpop.f32.mrb[2].mxu0  ;;  %v210_v28 = vpop.f32.mrb[0].mxu1  ;;  %v2045_v25 = vld [vmem:[%s2834_s4 + $0x300] ss:$16 sps:$4 sm:$0xff]  }
 0x112   :  { %v172_v29 = vadd.f32 %v171_v27, %v83_v19  ;;  %v173_v30 = vpop.f32.mrb[3].mxu0  ;;  %v211_v31 = vadd.f32 %v210_v28, %v91_v21  ;;  %v212_v32 = vpop.f32.mrb[1].mxu1  ;;  %v219_v36 = vmax.f32 %v168_v24, 0.0  ;;  %v2041_v19 = vld [vmem:[%s2834_s4 + $0x2e4] ss:$16 sps:$4 sm:$0xff]  }
 0x113   :  { %v174_v33 = vadd.f32 %v173_v30, %v87_v20  ;;  %v213_v34 = vadd.f32 %v212_v32, %v95_v23  ;;  %v214_v35 = vpop.f32.mrb[2].mxu1  ;;  %v220_v41 = vmax.f32 %v170_v26, 0.0  ;;  %v2044_v20 = vld [vmem:[%s2834_s4 + $0x2ec] ss:$16 sps:$4 sm:$0xff]   ;;  %v2048_v26 = vld [vmem:[%s2834_s4 + $0x308] ss:$16 sps:$4 sm:$0xff]  }
 0x114   :  { %v223_v37 = vmax.f32 %v172_v29, 0.0  ;;  %v221_v38 = vmax.f32 %v211_v31, 0.0  ;;  %v215_v39 = vadd.f32 %v214_v35, %v91_v21  ;;  %v216_v40 = vpop.f32.mrb[3].mxu1  ;;  %v2039_v21 = vld [vmem:[%s2834_s4 + $0x2e0] ss:$16 sps:$4 sm:$0xff]  }
 0x115   :  { %v224_v42 = vmax.f32 %v174_v33, 0.0  ;;  %v222_v43 = vmax.f32 %v213_v34, 0.0  ;;  %v217_v44 = vadd.f32 %v216_v40, %v95_v23  ;;  %v2047_v23 = vld [vmem:[%s2834_s4 + $0x304] ss:$16 sps:$4 sm:$0xff]   ;;  %v2050_v24 = vld [vmem:[%s2834_s4 + $0x30c] ss:$16 sps:$4 sm:$0xff]  }
 0x116   :  { %v227_v45 = vpack.c.bf16 %v223_v37, %v219_v36  ;;  %v225_v46 = vmax.f32 %v215_v39, 0.0  ;;  %v2053_v27 = vld [vmem:[%s2834_s4 + $0x324] ss:$16 sps:$4 sm:$0xff]   ;;  %v2056_v28 = vld [vmem:[%s2834_s4 + $0x32c] ss:$16 sps:$4 sm:$0xff]  }
 0x117   :  { %v228_v47 = vpack.c.bf16 %v224_v42, %v220_v41  ;;  %v226_v50 = vmax.f32 %v217_v44, 0.0  ;;  %v2051_v29 = vld [vmem:[%s2834_s4 + $0x320] ss:$16 sps:$4 sm:$0xff]   ;;  %v2054_v30 = vld [vmem:[%s2834_s4 + $0x328] ss:$16 sps:$4 sm:$0xff]  }
 0x118   :  { %v2530_v53 = vpack.c.bf16 %v225_v46, %v221_v38  ;;  %v2059_v31 = vld [vmem:[%s2834_s4 + $0x344] ss:$16 sps:$4 sm:$0xff]   ;;  %v2062_v32 = vld [vmem:[%s2834_s4 + $0x34c] ss:$16 sps:$4 sm:$0xff]   ;;  %v2057_v33 = vld [vmem:[%s2834_s4 + $0x340] ss:$16 sps:$4 sm:$0xff]  }
 0x119   :  { %1053 = vmatprep.mubr.bf16.mxu0 %v228_v47  ;;  %1139 = vmatprep.mubr.bf16.mxu1 %v228_v47  ;;  %v230_v54 = vpack.c.bf16 %v226_v50, %v222_v43  ;;  %v2060_v34 = vld [vmem:[%s2834_s4 + $0x348] ss:$16 sps:$4 sm:$0xff]   ;;  %v2065_v35 = vld [vmem:[%s2834_s4 + $0x364] ss:$16 sps:$4 sm:$0xff]   ;;  %v2068_v36 = vld [vmem:[%s2834_s4 + $0x36c] ss:$16 sps:$4 sm:$0xff]  }
 0x11a   :  { %1054 = vmatmul.mubr.bf16.vlgmr.msra.gmra.mrb[4].mxu0 %v227_v45  ;;  %1140 = vmatmul.mubr.bf16.vlgmr.msra.gmra.mrb[4].mxu1 %v227_v45  ;;  %v2063_v37 = vld [vmem:[%s2834_s4 + $0x360] ss:$16 sps:$4 sm:$0xff]   ;;  %v2066_v38 = vld [vmem:[%s2834_s4 + $0x368] ss:$16 sps:$4 sm:$0xff]   ;;  %v2071_v39 = vld [vmem:[%s2834_s4 + $0x384] ss:$16 sps:$4 sm:$0xff]  }
 0x11b   :  { %1065 = vmatpush1.bf16.msra.mxu0 %v1997_v48  ;;  %1151 = vmatpush1.bf16.msra.mxu1 %v2000_v49  ;;  %v2074_v40 = vld [vmem:[%s2834_s4 + $0x38c] ss:$16 sps:$4 sm:$0xff]   ;;  %v2069_v41 = vld [vmem:[%s2834_s4 + $0x380] ss:$16 sps:$4 sm:$0xff]   ;;  %v2072_v42 = vld [vmem:[%s2834_s4 + $0x388] ss:$16 sps:$4 sm:$0xff]  }
 0x11c   :  { %1066 = vmatprep.subr.bf16.mxu0 %v2005_v51  ;;  %1152 = vmatprep.subr.bf16.mxu1 %v2008_v52  ;;  %v2077_v43 = vld [vmem:[%s2834_s4 + $0x3a4] ss:$16 sps:$4 sm:$0xff]   ;;  %v2080_v44 = vld [vmem:[%s2834_s4 + $0x3ac] ss:$16 sps:$4 sm:$0xff]   ;;  %v2075_v45 = vld [vmem:[%s2834_s4 + $0x3a0] ss:$16 sps:$4 sm:$0xff]  }
 0x11d   :  { %1096 = vmatprep.mubr.bf16.mxu0 %v230_v54  ;;  %1182 = vmatprep.mubr.bf16.mxu1 %v230_v54  ;;  %v2078_v46 = vld [vmem:[%s2834_s4 + $0x3a8] ss:$16 sps:$4 sm:$0xff]   ;;  %v2083_v47 = vld [vmem:[%s2834_s4 + $0x3c4] ss:$16 sps:$4 sm:$0xff]   ;;  %v2086_v48 = vld [vmem:[%s2834_s4 + $0x3cc] ss:$16 sps:$4 sm:$0xff]  }
 0x11e   :  { %v2081_v49 = vld [vmem:[%s2834_s4 + $0x3c0] ss:$16 sps:$4 sm:$0xff]   ;;  %v2084_v50 = vld [vmem:[%s2834_s4 + $0x3c8] ss:$16 sps:$4 sm:$0xff]   ;;  %v2089_v51 = vld [vmem:[%s2834_s4 + $0x3e4] ss:$16 sps:$4 sm:$0xff]  }
 0x11f   :  { %1067 = vmatpush1.bf16.msra.mxu0 %v2003_v55  ;;  %1153 = vmatpush1.bf16.msra.mxu1 %v2006_v56  ;;  %v2092_v52 = vld [vmem:[%s2834_s4 + $0x3ec] ss:$16 sps:$4 sm:$0xff]   ;;  %v2087_v54 = vld [vmem:[%s2834_s4 + $0x3e0] ss:$16 sps:$4 sm:$0xff]   ;;  %v2090_v55 = vld [vmem:[%s2834_s4 + $0x3e8] ss:$16 sps:$4 sm:$0xff]  }
 0x120   :  { %1068 = vmatprep.subr.bf16.mxu0 %v2011_v57  ;;  %1154 = vmatprep.subr.bf16.mxu1 %v2014_v58  ;;  %v2093_v56 = vld [vmem:[%s2836_s6 + $0x40] sm:$0xff]  }
 0x121   :  { %v2094_v57 = vld [vmem:[%s2836_s6 + $0xc0] sm:$0xff]  }
 0x122   :  { %v2095_v58 = vld [vmem:[%s2836_s6] sm:$0xff]  }
 0x123   :  { %1069 = vmatpush1.bf16.msra.mxu0 %v2009_v59  ;;  %1155 = vmatpush1.bf16.msra.mxu1 %v2012_v60  ;;  %v2096_v59 = vld [vmem:[%s2836_s6 + $0x80] sm:$0xff]   ;;  %v2097_v60 = vld [vmem:[%s2836_s6 + $0x48] sm:$0xff]  }
 0x124   :  { %1070 = vmatprep.subr.bf16.mxu0 %v2017_v61  ;;  %1156 = vmatprep.subr.bf16.mxu1 %v2020_v62  ;;  %v2098_v61 = vld [vmem:[%s2836_s6 + $0xc8] sm:$0xff]  }
 0x125   :  { %v2099_v62 = vld [vmem:[%s2836_s6 + $0x8] sm:$0xff]  }
 0x127   :  { %1071 = vmatpush1.bf16.msra.mxu0 %v2015_v63  ;;  %1157 = vmatpush1.bf16.msra.mxu1 %v2018_v0  ;;  %v2100_v63 = vld [vmem:[%s2836_s6 + $0x88] sm:$0xff]   ;;  %v2101_v0 = vld [vmem:[%s2836_s6 + $0x50] sm:$0xff]  }
 0x128   :  { %1072 = vmatprep.subr.bf16.mxu0 %v2023_v1  ;;  %1158 = vmatprep.subr.bf16.mxu1 %v2026_v2  ;;  %v2103_v1 = vld [vmem:[%s2836_s6 + $0x10] sm:$0xff]  }
 0x129   :  { %v2104_v2 = vld [vmem:[%s2836_s6 + $0x90] sm:$0xff]  }
 0x12b   :  { %1073 = vmatpush1.bf16.msra.mxu0 %v2021_v3  ;;  %1159 = vmatpush1.bf16.msra.mxu1 %v2024_v4  ;;  %v2105_v3 = vld [vmem:[%s2836_s6 + $0x58] sm:$0xff]  }
 0x12c   :  { %1074 = vmatprep.subr.bf16.mxu0 %v2029_v5  ;;  %1160 = vmatprep.subr.bf16.mxu1 %v2032_v6  ;;  %v2106_v4 = vld [vmem:[%s2836_s6 + $0xd8] sm:$0xff]  }
 0x12d   :  { %v2107_v5 = vld [vmem:[%s2836_s6 + $0x18] sm:$0xff]  }
 0x12e   :  { %v2108_v6 = vld [vmem:[%s2836_s6 + $0x98] sm:$0xff]  }
 0x12f   :  { %1075 = vmatpush1.bf16.msra.mxu0 %v2027_v7  ;;  %1161 = vmatpush1.bf16.msra.mxu1 %v2030_v8  ;;  %v2109_v7 = vld [vmem:[%s2836_s6 + $0x60] sm:$0xff]  }
 0x130   :  { %1076 = vmatprep.subr.bf16.mxu0 %v2035_v9  ;;  %1162 = vmatprep.subr.bf16.mxu1 %v2038_v10  ;;  %v2110_v8 = vld [vmem:[%s2836_s6 + $0xe0] sm:$0xff]  }
 0x131   :  { %v2111_v9 = vld [vmem:[%s2836_s6 + $0x20] sm:$0xff]  }
 0x132   :  { %v2112_v10 = vld [vmem:[%s2836_s6 + $0xa0] sm:$0xff]  }
 0x133   :  { %1077 = vmatpush1.bf16.msra.mxu0 %v2033_v11  ;;  %1163 = vmatpush1.bf16.msra.mxu1 %v2036_v15  ;;  %v2113_v11 = vld [vmem:[%s2836_s6 + $0x68] sm:$0xff]  }
 0x134   :  { %1078 = vmatprep.subr.bf16.mxu0 %v2041_v19  ;;  %1164 = vmatprep.subr.bf16.mxu1 %v2044_v20  ;;  %v2114_v15 = vld [vmem:[%s2836_s6 + $0xe8] sm:$0xff]  }
 0x135   :  { %v2115_v19 = vld [vmem:[%s2836_s6 + $0x28] sm:$0xff]  }
 0x136   :  { %v2116_v20 = vld [vmem:[%s2836_s6 + $0xa8] sm:$0xff]  }
 0x137   :  { %1079 = vmatpush1.bf16.msra.mxu0 %v2039_v21  ;;  %1165 = vmatpush1.bf16.msra.mxu1 %v2042_v22  ;;  %v2117_v21 = vld [vmem:[%s2836_s6 + $0x70] sm:$0xff]  }
 0x138   :  { %1080 = vmatprep.subr.bf16.mxu0 %v2047_v23  ;;  %1166 = vmatprep.subr.bf16.mxu1 %v2050_v24  ;;  %v2118_v22 = vld [vmem:[%s2836_s6 + $0xf0] sm:$0xff]  }
 0x139   :  { %v2119_v23 = vld [vmem:[%s2836_s6 + $0x30] sm:$0xff]  }
 0x13a   :  { %v2120_v24 = vld [vmem:[%s2836_s6 + $0xb0] sm:$0xff]  }
 0x13b   :  { %1081 = vmatpush1.bf16.msra.mxu0 %v2045_v25  ;;  %1167 = vmatpush1.bf16.msra.mxu1 %v2048_v26  ;;  %v2121_v25 = vld [vmem:[%s2836_s6 + $0x78] sm:$0xff]  }
 0x13c   :  { %1082 = vmatprep.subr.bf16.mxu0 %v2053_v27  ;;  %1168 = vmatprep.subr.bf16.mxu1 %v2056_v28  ;;  %v2122_v26 = vld [vmem:[%s2836_s6 + $0xf8] sm:$0xff]  }
 0x13d   :  { %v2123_v27 = vld [vmem:[%s2836_s6 + $0x38] sm:$0xff]  }
 0x13e   :  { %v2124_v28 = vld [vmem:[%s2836_s6 + $0xb8] sm:$0xff]  }
 0x13f   :  { %1083 = vmatpush1.bf16.msra.mxu0 %v2051_v29  ;;  %1169 = vmatpush1.bf16.msra.mxu1 %v2054_v30  ;;  %v1595_v29 = vld [vmem:[#allocation4] sm:$0xff]  ;;  %v1596_v30 = vld [vmem:[#allocation4 + $0x8] sm:$0xff] }
 0x140   :  { %1084 = vmatprep.subr.bf16.mxu0 %v2059_v31  ;;  %1170 = vmatprep.subr.bf16.mxu1 %v2062_v32  ;;  %v359_v31 = vld [vmem:[%s2835_s5] sm:$0xf] }
 0x141   :  { %1599 = vrot.lane.b32.xlu0 %v1595_v29, %s2211_s9  ;;  %v364_v32 = vrot.slane %v359_v31, %v82_v14 }
 0x143   :  { %1085 = vmatpush1.bf16.msra.mxu0 %v2057_v33  ;;  %1171 = vmatpush1.bf16.msra.mxu1 %v2060_v34  ;;  %v372_v33 = vrot.slane %v359_v31, %v90_v17  ;;  %v368_v34 = vrot.slane %v359_v31, %v86_v16 }
 0x144   :  { %1086 = vmatprep.subr.bf16.mxu0 %v2065_v35  ;;  %1172 = vmatprep.subr.bf16.mxu1 %v2068_v36  ;;  %v376_v35 = vrot.slane %v359_v31, %v94_v18 }
 0x145   :  { %1601 = vrot.lane.b32.xlu0 %v1596_v30, %s2211_s9 }
 0x147   :  { %1087 = vmatpush1.bf16.msra.mxu0 %v2063_v37  ;;  %1173 = vmatpush1.bf16.msra.mxu1 %v2066_v38 }
 0x148   :  { %1088 = vmatprep.subr.bf16.mxu0 %v2071_v39  ;;  %1174 = vmatprep.subr.bf16.mxu1 %v2074_v40 }
 0x14b   :  { %1089 = vmatpush1.bf16.msra.mxu0 %v2069_v41  ;;  %1175 = vmatpush1.bf16.msra.mxu1 %v2072_v42 }
 0x14c   :  { %1090 = vmatprep.subr.bf16.mxu0 %v2077_v43  ;;  %1176 = vmatprep.subr.bf16.mxu1 %v2080_v44 }
 0x14f   :  { %1091 = vmatpush1.bf16.msra.mxu0 %v2075_v45  ;;  %1177 = vmatpush1.bf16.msra.mxu1 %v2078_v46 }
 0x150   :  { %1092 = vmatprep.subr.bf16.mxu0 %v2083_v47  ;;  %1178 = vmatprep.subr.bf16.mxu1 %v2086_v48 }
 0x153   :  { %1093 = vmatpush1.bf16.msra.mxu0 %v2081_v49  ;;  %1179 = vmatpush1.bf16.msra.mxu1 %v2084_v50 }
 0x154   :  { %1094 = vmatprep.subr.bf16.mxu0 %v2089_v51  ;;  %1180 = vmatprep.subr.bf16.mxu1 %v2092_v52 }
 0x157   :  { %1095 = vmatpush1.bf16.msra.mxu0 %v2087_v54  ;;  %1181 = vmatpush1.bf16.msra.mxu1 %v2090_v55 }
 0x158   :  { %1824 = vmatprep.subr.bf16.mxu0 %v2093_v56  ;;  %1846 = vmatprep.subr.bf16.mxu1 %v2094_v57 }
 0x15a   :  { %1097 = vmatmul.mubr.bf16.vlgmr.msra.gmra.mrb[4].mxu0 %v2530_v53  ;;  %1183 = vmatmul.mubr.bf16.vlgmr.msra.gmra.mrb[4].mxu1 %v2530_v53  ;;  %v2102_v53 = vld [vmem:[%s2836_s6 + $0xd0] sm:$0xff]  }
 0x15b   :  { %1825 = vmatpush3.bf16.msra.mxu0 %v2095_v58  ;;  %1847 = vmatpush3.bf16.msra.mxu1 %v2096_v59 }
 0x15c   :  { %1826 = vmatprep.subr.bf16.mxu0 %v2097_v60  ;;  %1848 = vmatprep.subr.bf16.mxu1 %v2098_v61  ;;  %v1551_v60 = vand.u32 127, %v80_v12 }
 0x15e   :  { %vm1552_vm2 = vcmp.ge.s32.totalorder %v1551_v60, 10  ;;  %vm1553_vm3 = vcmp.lt.s32.totalorder %v1551_v60, 30  ;;  %vm1555_vm5 = vcmp.ge.s32.totalorder %v1551_v60, 20 }
 0x15f   :  { %1827 = vmatpush3.bf16.msra.mxu0 %v2099_v62  ;;  %1849 = vmatpush3.bf16.msra.mxu1 %v2100_v63  ;;  %v1774_v63 = vld [vmem:[%s2837_s7] ss:$0 sm:$0xff]  ;;  %vm1554_vm4 = vmand %vm1552_vm2, %vm1553_vm3 }
 0x160   :  { %1828 = vmatprep.subr.bf16.mxu0 %v2101_v0  ;;  %1850 = vmatprep.subr.bf16.mxu1 %v2102_v53  ;;  %vm1556_vm8 = vmand %vm1555_vm5, %vm1553_vm3 }
 0x163   :  { %1829 = vmatpush3.bf16.msra.mxu0 %v2103_v1  ;;  %1851 = vmatpush3.bf16.msra.mxu1 %v2104_v2 }
 0x164   :  { %1830 = vmatprep.subr.bf16.mxu0 %v2105_v3  ;;  %1852 = vmatprep.subr.bf16.mxu1 %v2106_v4 }
 0x167   :  { %1831 = vmatpush3.bf16.msra.mxu0 %v2107_v5  ;;  %1853 = vmatpush3.bf16.msra.mxu1 %v2108_v6 }
 0x168   :  { %1832 = vmatprep.subr.bf16.mxu0 %v2109_v7  ;;  %1854 = vmatprep.subr.bf16.mxu1 %v2110_v8 }
 0x16b   :  { %1833 = vmatpush3.bf16.msra.mxu0 %v2111_v9  ;;  %1855 = vmatpush3.bf16.msra.mxu1 %v2112_v10 }
 0x16c   :  { %1834 = vmatprep.subr.bf16.mxu0 %v2113_v11  ;;  %1856 = vmatprep.subr.bf16.mxu1 %v2114_v15 }
 0x16f   :  { %1835 = vmatpush3.bf16.msra.mxu0 %v2115_v19  ;;  %1857 = vmatpush3.bf16.msra.mxu1 %v2116_v20 }
 0x170   :  { %1836 = vmatprep.subr.bf16.mxu0 %v2117_v21  ;;  %1858 = vmatprep.subr.bf16.mxu1 %v2118_v22 }
 0x173   :  { %1837 = vmatpush3.bf16.msra.mxu0 %v2119_v23  ;;  %1859 = vmatpush3.bf16.msra.mxu1 %v2120_v24 }
 0x174   :  { %1838 = vmatprep.subr.bf16.mxu0 %v2121_v25  ;;  %1860 = vmatprep.subr.bf16.mxu1 %v2122_v26 }
 0x177   :  { %1839 = vmatpush3.bf16.msra.mxu0 %v2123_v27  ;;  %1861 = vmatpush3.bf16.msra.mxu1 %v2124_v28 }
 0x22d   :  { %v1098_v36 = vpop.f32.mrb[4].mxu0  ;;  %v1184_v37 = vpop.f32.mrb[4].mxu1 }
 0x22e   :  { %v1868_v38 = vadd.f32 %v1098_v36, %v364_v32  ;;  %v1872_v39 = vadd.f32 %v1184_v37, %v372_v33  ;;  %v1100_v40 = vpop.f32.mrb[5].mxu0  ;;  %v1186_v41 = vpop.f32.mrb[5].mxu1 }
 0x22f   :  { %v1869_v42 = vadd.f32 %v1100_v40, %v368_v34  ;;  %v1873_v43 = vadd.f32 %v1186_v41, %v376_v35  ;;  %v1102_v44 = vpop.f32.mrb[6].mxu0  ;;  %v1188_v45 = vpop.f32.mrb[6].mxu1 }
 0x230   :  { %v1870_v14 = vadd.f32 %v1102_v44, %v364_v32  ;;  %v1874_v46 = vadd.f32 %v1188_v45, %v372_v33  ;;  %v1104_v47 = vpop.f32.mrb[7].mxu0  ;;  %v1190_v17 = vpop.f32.mrb[7].mxu1  ;;  %v1193_v16 = vmax.f32 %v1868_v38, 0.0  ;;  %v1195_v50 = vmax.f32 %v1872_v39, 0.0 }
 0x231   :  { %v1871_v48 = vadd.f32 %v1104_v47, %v368_v34  ;;  %v1875_v49 = vadd.f32 %v1190_v17, %v376_v35  ;;  %v1194_v51 = vmax.f32 %v1869_v42, 0.0  ;;  %v1196_v52 = vmax.f32 %v1873_v43, 0.0  ;;  %v1600_v38 = vpop.permute.xlu0 %1599 }
 0x232   :  { %v1197_v13 = vmax.f32 %v1870_v14, 0.0  ;;  %v1199_v18 = vmax.f32 %v1874_v46, 0.0 }
 0x233   :  { %v1198_v54 = vmax.f32 %v1871_v48, 0.0  ;;  %v1200_v55 = vmax.f32 %v1875_v49, 0.0 }
 0x234   :  { %v1201_v56 = vpack.c.bf16 %v1197_v13, %v1193_v16  ;;  %v1203_v57 = vpack.c.bf16 %v1199_v18, %v1195_v50 }
 0x235   :  { %v1202_v58 = vpack.c.bf16 %v1198_v54, %v1194_v51  ;;  %v1204_v59 = vpack.c.bf16 %v1200_v55, %v1196_v52  ;;  %v1602_v43 = vpop.permute.xlu0 %1601 }
 0x237   :  { %1500 = vmatprep.mubr.bf16.mxu0 %v1202_v58  ;;  %1541 = vmatprep.mubr.bf16.mxu1 %v1204_v59 }
 0x238   :  { %1501 = vmatmul.mubr.bf16.vlgmr.msra.gmra.mrb[8].mxu0 %v1201_v56  ;;  %1542 = vmatmul.mubr.bf16.vlgmr.msra.gmra.mrb[8].mxu1 %v1203_v57 }
 0x30b   :  { %v1840_v61 = vpop.f32.mrb[8].mxu0  ;;  %v1862_v62 = vpop.f32.mrb[8].mxu1 }
 0x30c   :  { %v1841_v0 = vpop.f32.mrb[9].mxu0  ;;  %v1863_v53 = vpop.f32.mrb[9].mxu1 }
 0x30d   :  { %v1842_v1 = vadd.f32 %v1841_v0, %v1840_v61  ;;  %v1864_v2 = vadd.f32 %v1863_v53, %v1862_v62  ;;  %v1843_v3 = vpop.f32.mrb[10].mxu0  ;;  %v1865_v4 = vpop.f32.mrb[10].mxu1 }
 0x30e   :  { %v1844_v5 = vpop.f32.mrb[11].mxu0  ;;  %v1866_v6 = vpop.f32.mrb[11].mxu1 }
 0x30f   :  { %v1503_v7 = vadd.f32 %v1842_v1, %v1774_v63  ;;  %v1845_v8 = vadd.f32 %v1844_v5, %v1843_v3  ;;  %v1867_v9 = vadd.f32 %v1866_v6, %v1865_v4 }
 0x311   :  { %v1544_v12 = vadd.f32 %v1864_v2, %v1503_v7  ;;  %v1506_v10 = vadd.f32 %v1845_v8, %v1774_v63 }
 0x313   :  { %v1557_v11 = vsel %vm1554_vm4, %v1544_v12, 0.0  ;;  %v1547_v15 = vadd.f32 %v1867_v9, %v1506_v10 }
 0x314   :  { %v1559_v19 = vmul.f32 1.442695, %v1557_v11 }
 0x315   :  { %v1558_v20 = vsel %vm1554_vm4, %v1547_v15, 0.0 }
 0x316   :  { %2125 = vpow2.f32 %v1559_v19  ;;  %v1561_v21 = vmul.f32 1.442695, %v1558_v20 }
 0x318   :  { %2127 = vpow2.f32 %v1561_v21 }
 0x320   :  { %v2126_v22 = vpop.eup %2125 }
 0x321   :  { %v1563_v23 = vadd.f32 1e-09, %v2126_v22 }
 0x322   :  { %v2128_v24 = vpop.eup %2127 }
 0x323   :  { %2129 = vrsqrt.f32 %v1563_v23  ;;  %v1564_v25 = vadd.f32 1e-09, %v2128_v24  ;;  %vm1567_vm6 = vcmp.eq.f32.partialorder %v1563_v23, inf  ;;  %v1570_v30 = vand.u32 2147483648, %v1563_v23 }
 0x324   :  { %vm1569_vm7 = vcmp.eq.f32.partialorder %v1563_v23, 0.0 }
 0x325   :  { %2131 = vrsqrt.f32 %v1564_v25  ;;  %vm1574_vm9 = vcmp.eq.f32.partialorder %v1564_v25, inf  ;;  %v1577_v33 = vand.u32 2147483648, %v1564_v25  ;;  %vm1576_vm10 = vcmp.eq.f32.partialorder %v1564_v25, 0.0 }
 0x32d   :  { %v2130_v26 = vpop.eup %2129 }
 0x32e   :  { %v1566_v27 = vmul.f32 %v2130_v26, %v1563_v23 }
 0x32f   :  { %v2132_v28 = vpop.eup %2131 }
 0x330   :  { %v1568_v29 = vsel %vm1567_vm6, %v1563_v23, %v1566_v27  ;;  %v1573_v31 = vmul.f32 %v2132_v28, %v1564_v25 }
 0x331   :  { %v1571_v32 = vsel %vm1569_vm7, %v1570_v30, %v1568_v29 }
 0x332   :  { %v1575_v34 = vsel %vm1574_vm9, %v1564_v25, %v1573_v31  ;;  %v1579_v36 = vsel %vm1556_vm8, %v1571_v32, %v1544_v12 }
 0x333   :  { %v1578_v35 = vsel %vm1576_vm10, %v1577_v33, %v1575_v34 }
 0x334   :  { %v1580_v37 = vsel %vm1556_vm8, %v1578_v35, %v1547_v15 }
 0x335   :  { %v1818_v39 = vpack.c.bf16 %v1580_v37, %v1579_v36 }
 0x337   :  { %1819 = vst [vmem:[%s2838_s8] sm:$0xff] %v1818_v39   ;;  %v1822_v40 = vunpack.c.l.bf16 %v1818_v39  ;;  %v1823_v42 = vunpack.c.h.bf16 %v1818_v39 }
 0x339   :  { %v1605_v41 = vmul.f32 %v1822_v40, %v1600_v38  ;;  %v1606_v44 = vmul.f32 %v1823_v42, %v1602_v43 }
 0x33b   :  { %1609 = vrot.lane.b32.xlu1 %v1605_v41, %s2212_s13 }
 0x33f   :  { %1611 = vrot.lane.b32.xlu1 %v1606_v44, %s2212_s13 }
 0x3ad   :  { %v1610_v45 = vpop.permute.xlu1 %1609 }
 0x3ae   :  { %v1615_v14 = vadd.f32 %v1822_v40, %v1610_v45 }
 0x3b0   :  { %v1813_v46 = vpack.c.bf16 %v1615_v14, %v1615_v14 }
 0x3b1   :  { %v1612_v47 = vpop.permute.xlu1 %1611 }
 0x3b2   :  { %v1616_v17 = vadd.f32 %v1823_v42, %v1612_v47  ;;  %1623 = vrot.lane.b32.xlu0 %v1813_v46, %s2213_s14 }
 0x3b4   :  { %v1814_v48 = vpack.c.bf16 %v1616_v17, %v1616_v17 }
 0x3b6   :  { %1625 = vrot.lane.b32.xlu1 %v1814_v48, %s2213_s14 }
 0x424   :  { %v1624_v49 = vpop.permute.xlu0 %1623 }
 0x425   :  { %1630 = vst.msk [vmem:[%s2838_s8] sm:$0xf] %vm1629_vm11, %v1624_v49 }
 0x428   :  { %v1626_v16 = vpop.permute.xlu1 %1625 }
 0x429   :  { %1631 = vst.msk [vmem:[%s2838_s8 + $0x4] sm:$0xf] %vm1629_vm11, %v1626_v16 }
 0x42a   :  { %1636 = vsyncpa [#allocation3], 1 }
 0x42b   :  { %1637 = vsyncpa [#allocation5], 1 }

</bundles_post_ra>
